<compile_context>
chip_gen: v7x
topology: tpu7x:2x2x1
jax: 0.10.0
libtpu: 0.0.40
codegen_flags: <defaults>
</compile_context>

<pallas_src>
import functools

import jax
import jax.numpy as jnp
from jax.experimental import pallas as pl
from jax.experimental.pallas import tpu as pltpu


def _round_up(x: int, m: int) -> int:
    return (x + m - 1) // m * m


def _scaled_embedding_kernel(scale, idx_ref, w_ref, o_ref):
    """One token-block per grid step.

    idx_ref: (TB, 1)  int32   token indices (VMEM)
    w_ref:   (V, D)   float   full embedding table (VMEM-resident, constant index_map)
    o_ref:   (TB, D)  float   scaled embeddings
    """
    tb = idx_ref.shape[0]
    v = w_ref.shape[0]

    idx = idx_ref[...]                                          # (TB, 1)
    # 2-D iota (TPU requires >=2-D iota); one-hot over the vocab axis.
    iota = jax.lax.broadcasted_iota(jnp.int32, (tb, v), 1)      # (TB, V)
    onehot = jnp.where(iota == idx, 1.0, 0.0).astype(w_ref.dtype)

    # Gather as a single MXU contraction: (TB, V) x (V, D) -> (TB, D).
    emb = jnp.dot(onehot, w_ref[...],
                  preferred_element_type=jnp.float32,
                  precision=jax.lax.Precision.HIGHEST)
    o_ref[...] = (emb * scale).astype(o_ref.dtype)


def scaled_embedding(x, weight, scale, *, tok_block=128):
    """ScaledEmbedding.forward: weight[x] * scale.

    x:      int array of arbitrary shape (token indices)
    weight: (num_embeddings, embedding_dim) table (already divided by `scale`
            at init time, exactly like the PyTorch module)
    """
    orig_shape = x.shape
    flat = x.reshape(-1).astype(jnp.int32)
    n = flat.shape[0]
    v, d = weight.shape

    # Token block: multiple of 8 (sublane granularity), capped at tok_block.
    tb = min(int(tok_block), _round_up(n, 8))
    n_pad = _round_up(n, tb)
    flat = jnp.pad(flat, (0, n_pad - n))            # padded tokens read row 0, cropped below
    idx2 = flat.reshape(n_pad, 1)

    out = pl.pallas_call(
        functools.partial(_scaled_embedding_kernel, float(scale)),
        out_shape=jax.ShapeDtypeStruct((n_pad, d), weight.dtype),
        grid=(n_pad // tb,),
        in_specs=[
            pl.BlockSpec((tb, 1), lambda i: (i, 0)),   # per-block token indices
            pl.BlockSpec((v, d), lambda i: (0, 0)),    # whole table, constant block -> 1 DMA
        ],
        out_specs=pl.BlockSpec((tb, d), lambda i: (i, 0)),
        compiler_params=pltpu.CompilerParams(dimension_semantics=("parallel",)),
    )(idx2, weight)

    return out[:n].reshape(*orig_shape, d)


if __name__ == "__main__":
    NUM_EMBEDDINGS = 32
    EMBEDDING_DIM = 128          # lane-dense output (multiple of 128)
    SCALE = 10.0
    B, S = 2, 16                 # batch of index sequences

    key = jax.random.PRNGKey(0)
    wkey, xkey = jax.random.split(key)

    # nn.Embedding init ~ N(0, 1); ScaledEmbedding divides the stored weight by `scale`.
    weight = jax.random.normal(wkey, (NUM_EMBEDDINGS, EMBEDDING_DIM), jnp.float32) / SCALE
    x = jax.random.randint(xkey, (B, S), 0, NUM_EMBEDDINGS, dtype=jnp.int32)

    out = scaled_embedding(x, weight, SCALE)
    out = jax.block_until_ready(out)

    ref = weight[x] * SCALE      # pure-JAX reference of the module's forward
    assert out.shape == (B, S, EMBEDDING_DIM), out.shape
    assert bool(jnp.all(jnp.isfinite(out)))
    # Tolerance covers MXU f32 multi-pass rounding; a wrong-row gather would be O(1) off.
    assert bool(jnp.max(jnp.abs(out - ref)) < 2e-2), float(jnp.max(jnp.abs(out - ref)))
    print("KERNEL_OK")
</pallas_src>

<mosaic_0001>
module attributes {stable_mosaic.version = 11 : i64} {
  func.func @_scaled_embedding_kernel(%arg0: i32, %arg1: memref<32x1xi32, #tpu.memory_space<vmem>>, %arg2: memref<32x128xf32, #tpu.memory_space<vmem>>, %arg3: memref<32x128xf32, #tpu.memory_space<vmem>>) attributes {dimension_semantics = [#tpu.dimension_semantics<parallel>], iteration_bounds = array<i64: 1>, scalar_prefetch = 0 : i64, scratch_operands = 0 : i64, tpu.core_type = #tpu.core_type<tc>, window_params = [{transform_indices = @transform_0, window_bounds = array<i64: 32, 1>}, {pipeline_mode = #tpu.pipeline_mode<synchronous>, transform_indices = @transform_1, window_bounds = array<i64: 32, 128>}, {transform_indices = @transform_2, window_bounds = array<i64: 32, 128>}]} {
    %c0 = arith.constant 0 : index
    %c0_0 = arith.constant 0 : index
    %0 = vector.load %arg1[%c0, %c0_0] : memref<32x1xi32, #tpu.memory_space<vmem>>, vector<32x1xi32>
    %1 = tpu.iota {dimensions = array<i32: 1>} : vector<32x32xi32>
    %2 = vector.broadcast %0 : vector<32x1xi32> to vector<32x32xi32>
    %3 = arith.cmpi eq, %1, %2 : vector<32x32xi32>
    %cst = arith.constant 1.000000e+00 : f32
    %cst_1 = arith.constant 0.000000e+00 : f32
    %4 = vector.broadcast %cst : f32 to vector<32x32xf32>
    %5 = vector.broadcast %cst_1 : f32 to vector<32x32xf32>
    %6 = arith.select %3, %4, %5 : vector<32x32xi1>, vector<32x32xf32>
    %c0_2 = arith.constant 0 : index
    %c0_3 = arith.constant 0 : index
    %7 = vector.load %arg2[%c0_2, %c0_3] : memref<32x128xf32, #tpu.memory_space<vmem>>, vector<32x128xf32>
    %cst_4 = arith.constant dense<0.000000e+00> : vector<32x128xf32>
    %8 = tpu.matmul %6, %7, %cst_4 {dimension_numbers = #tpu.dot_dimension_numbers<[1], [0], [0], [1], [0, 0, 1, 1], [], []>, precision = #tpu.contract_precision<fp32>} : vector<32x32xf32>, vector<32x128xf32>, vector<32x128xf32> -> vector<32x128xf32>
    %cst_5 = arith.constant 1.000000e+01 : f32
    %9 = vector.broadcast %cst_5 : f32 to vector<32x128xf32>
    %10 = arith.mulf %8, %9 : vector<32x128xf32>
    %c0_6 = arith.constant 0 : index
    %c0_7 = arith.constant 0 : index
    %11 = vector.load %arg3[%c0_6, %c0_7] : memref<32x128xf32, #tpu.memory_space<vmem>>, vector<32x128xf32>
    tpu.vector_store %arg3[%c0_6, %c0_7], %10 {strides = array<i32>} : memref<32x128xf32, #tpu.memory_space<vmem>>, vector<32x128xf32>,
    return
  }
  func.func @transform_0(%arg0: i32) -> (i32, i32) {
    %c0_i32 = arith.constant 0 : i32
    %c0_i32_0 = arith.constant 0 : i32
    return %arg0, %c0_i32 : i32, i32
  }
  func.func @transform_1(%arg0: i32) -> (i32, i32) {
    %c0_i32 = arith.constant 0 : i32
    %c0_i32_0 = arith.constant 0 : i32
    %c0_i32_1 = arith.constant 0 : i32
    return %c0_i32, %c0_i32_0 : i32, i32
  }
  func.func @transform_2(%arg0: i32) -> (i32, i32) {
    %c0_i32 = arith.constant 0 : i32
    %c0_i32_0 = arith.constant 0 : i32
    return %arg0, %c0_i32 : i32, i32
  }
}

</mosaic_0001>

<bundles_post_ra>
// kernel: tpu_custom_call.1
= control target key start
LH: loop header
LB: loop body
LE: loop exit
PB: predicated region body
PF: predicated region fallthrough
CT: control target
= control target key end

     0   :  { %v936_v2 = vmov 0   ;;  %s1028_s0 = inlined_call_operand.vmem [shape: s32[32,1], index: 0, kind: input, shape index: {}]   ;;  %s1029_s1 = inlined_call_operand.vmem [shape: f32[32,128], index: 1, kind: input, shape index: {}]   ;;  %s1030_s2 = inlined_call_operand.hbm [shape: f32[32,128], index: 2, kind: output, shape index: {}]  }
   0x1   :  { %v14_v0 = vld [vmem:[%s1028_s0 + $0x10] sm:$0xff]  ;;  %v12_v1 = vld [vmem:[%s1028_s0] sm:$0xff]  ;;  %911 = vset.pattern.permute.xlu1 %v936_v2  ;;  %910 = vset.pattern.permute.xlu0 %v936_v2  ;;  %v39_v4 = vld [vmem:[%s1029_s1 + $0x8] sm:$0xff] }
   0x2   :  { %v38_v3 = vld [vmem:[%s1029_s1] sm:$0xff]  ;;  %25 = vperm.xlu1 %911, %v14_v0   ;;  %19 = vperm.xlu0 %910, %v12_v1   ;;  %v59_v6 = vand.u32 4294901760, %v39_v4 }
   0x3   :  { %v56_v5 = vand.u32 4294901760, %v38_v3 }
   0x4   :  { %7 = vsyncpa [#allocation3], 0  ;;  %v15_v7 = vld [vmem:[%s1028_s0 + $0x18] sm:$0xff]  ;;  %v13_v8 = vld [vmem:[%s1028_s0 + $0x8] sm:$0xff]  ;;  %v173_v16 = vsub.f32 %v39_v4, %v59_v6  ;;  %v16_v37 = vlaneseq  ;;  %vm42_vm0 = vcmask 261120   ;;  %v937_v41 = vmov 0.0  }
   0x5   :  { %v974_v9 = vpack.c.bf16 %v59_v6, %v56_v5  ;;  %v40_v10 = vld [vmem:[%s1029_s1 + $0x10] sm:$0xff]  ;;  %v41_v11 = vld [vmem:[%s1029_s1 + $0x18] sm:$0xff]  ;;  %v166_v15 = vsub.f32 %v38_v3, %v56_v5  ;;  %s938_s0 = smov [#allocation2]  }
   0x6   :  { %v62_v12 = vand.u32 4294901760, %v40_v10  ;;  %v65_v13 = vand.u32 4294901760, %v41_v11  ;;  %28 = vperm.xlu1 %911, %v15_v7   ;;  %22 = vperm.xlu0 %910, %v13_v8   ;;  %v174_v18 = vand.u32 4294901760, %v173_v16  ;;  %v17_v38 = vand.u32 127, %v16_v37  ;;  %s682_s1 = sshll.u32 %s938_s0, 4  ;;  %s683_s1 = int_to_ptr.vmem [resolvable:$true] %s682_s1 }
   0x7   :  { %862 = vmatprep.subr.bf16.mxu0 %v974_v9  ;;  %838 = vmatprep.subr.bf16.mxu1 %v974_v9  ;;  %v167_v17 = vand.u32 4294901760, %v166_v15  ;;  %v853_v35 = vpack.c.bf16 %v173_v16, %v166_v15  ;;  %s912_s25 = scalar_lea.vmem %s683_s1, 512  ;;  %p917_p1 = scmp.lt.s32.totalorder %s683_s1, %s683_s1 }
   0x8   :  { %v984_v14 = vpack.c.bf16 %v65_v13, %v62_v12  ;;  %864 = vmatpush3.bf16.msra.mxu0 %v974_v9  ;;  %840 = vmatpush3.bf16.msra.mxu1 %v974_v9  ;;  %v175_v21 = vsub.f32 %v173_v16, %v174_v18  ;;  %v180_v22 = vsub.f32 %v40_v10, %v62_v12  ;;  %p913_p0 = scmp.ne.s32.totalorder %s683_s1, %s912_s25  ;;  %p918_p2 = scmp.lt.s32.totalorder %s912_s25, %s912_s25 }
   0x9   :  { %v869_v19 = vpack.c.bf16 %v174_v18, %v167_v17  ;;  %v168_v20 = vsub.f32 %v166_v15, %v167_v17  ;;  %v187_v23 = vsub.f32 %v41_v11, %v65_v13 }
   0xa   :  { %866 = vmatprep.subr.bf16.mxu0 %v984_v14  ;;  %842 = vmatprep.subr.bf16.mxu1 %v984_v14  ;;  %v176_v25 = vand.u32 4294901760, %v175_v21  ;;  %v181_v26 = vand.u32 4294901760, %v180_v22  ;;  %p919_p3 = por %p918_p2, %p917_p1 }
   0xb   :  { %v169_v24 = vand.u32 4294901760, %v168_v20  ;;  %v188_v27 = vand.u32 4294901760, %v187_v23  ;;  %v992_v36 = vpack.c.bf16 %v187_v23, %v180_v22 }
   0xc   :  { %868 = vmatpush3.bf16.msra.mxu0 %v984_v14  ;;  %844 = vmatpush3.bf16.msra.mxu1 %v984_v14  ;;  %v182_v30 = vsub.f32 %v180_v22, %v181_v26  ;;  %p920_p4 = pnand %p919_p3, %p913_p0 }
   0xd   :  { %870 = vmatprep.subr.bf16.mxu0 %v869_v19  ;;  %v845_v28 = vpack.c.bf16 %v176_v25, %v169_v24  ;;  %v873_v29 = vpack.c.bf16 %v188_v27, %v181_v26  ;;  %v189_v31 = vsub.f32 %v187_v23, %v188_v27 }
   0xe   :  { %v183_v32 = vand.u32 4294901760, %v182_v30 }
   0xf   :  { %846 = vmatprep.subr.bf16.mxu1 %v845_v28  ;;  %v190_v33 = vand.u32 4294901760, %v189_v31 }
  0x11   :  { %v849_v34 = vpack.c.bf16 %v190_v33, %v183_v32 }
  0x81   :  { %v26_v39 = vpop.permute.xlu1 %25  ;;  %v20_v40 = vpop.permute.xlu0 %19 }
  0x82   :  { %vm32_vm1 = vcmp.eq.s32.totalorder %v17_v38, %v26_v39  ;;  %vm30_vm2 = vcmp.eq.s32.totalorder %v17_v38, %v20_v40 }
  0x83   :  { %v36_v42 = vsel %vm32_vm1, 1.0, %v937_v41  ;;  %v34_v43 = vsel %vm30_vm2, 1.0, %v937_v41 }
  0x84   :  { %v50_v44 = vsel %vm42_vm0, %v36_v42, 0  ;;  %v44_v45 = vsel %vm42_vm0, %v34_v43, 0 }
  0x85   :  { %v145_v46 = vsub.f32 %v50_v44, %v50_v44  ;;  %v125_v47 = vsub.f32 %v44_v45, %v44_v45  ;;  %v29_v48 = vpop.permute.xlu1 %28  ;;  %v23_v49 = vpop.permute.xlu0 %22 }
  0x86   :  { %vm33_vm3 = vcmp.eq.s32.totalorder %v17_v38, %v29_v48  ;;  %vm31_vm4 = vcmp.eq.s32.totalorder %v17_v38, %v23_v49 }
  0x87   :  { %v37_v50 = vsel %vm33_vm3, 1.0, %v937_v41  ;;  %v35_v51 = vsel %vm31_vm4, 1.0, %v937_v41  ;;  %v126_v52 = vand.u32 4294901760, %v125_v47  ;;  %v146_v55 = vand.u32 4294901760, %v145_v46 }
  0x88   :  { %v53_v53 = vsel %vm42_vm0, %v37_v50, 0  ;;  %v47_v54 = vsel %vm42_vm0, %v35_v51, 0 }
  0x89   :  { %v155_v56 = vsub.f32 %v53_v53, %v53_v53  ;;  %v135_v57 = vsub.f32 %v47_v54, %v47_v54  ;;  %803 = vmatprep.mubr.f32.mxu0 %v126_v52  ;;  %v127_v58 = vsub.f32 %v125_v47, %v126_v52  ;;  %v147_v62 = vsub.f32 %v145_v46, %v146_v55 }
  0x8b   :  { %v128_v59 = vand.u32 4294901760, %v127_v58  ;;  %v136_v60 = vand.u32 4294901760, %v135_v57  ;;  %v156_v61 = vand.u32 4294901760, %v155_v56  ;;  %v148_v2 = vand.u32 4294901760, %v147_v62 }
  0x8d   :  { %761 = vmatprep.mubr.f32.mxu1 %v128_v59  ;;  %804 = vmatmul.mubr.f32.vlgmr.msra.gmra.mrb[0].mxu0 %v136_v60  ;;  %v137_v63 = vsub.f32 %v135_v57, %v136_v60  ;;  %v157_v1 = vsub.f32 %v155_v56, %v156_v61 }
  0x8e   :  { %806 = vmatprep.mubr.f32.mxu0 %v146_v55  ;;  %872 = vmatpush3.bf16.msra.mxu0 %v869_v19 }
  0x8f   :  { %v138_v0 = vand.u32 4294901760, %v137_v63  ;;  %874 = vmatprep.subr.bf16.mxu0 %v873_v29  ;;  %v158_v3 = vand.u32 4294901760, %v157_v1 }
  0x91   :  { %762 = vmatmul.mubr.f32.vlgmr.msra.gmra.mrb[0].mxu1 %v138_v0  ;;  %807 = vmatmul.mubr.f32.gmra.mrb[2].mxu0 %v156_v61 }
  0x92   :  { %848 = vmatpush3.bf16.msra.mxu1 %v845_v28  ;;  %764 = vmatprep.mubr.f32.mxu1 %v148_v2 }
  0x93   :  { %876 = vmatpush3.bf16.msra.mxu0 %v873_v29  ;;  %817 = vmatprep.mubr.msk.f32.mxu0 %vm42_vm0, %v34_v43 }
  0x94   :  { %850 = vmatprep.subr.bf16.mxu1 %v849_v34  ;;  %878 = vmatprep.subr.bf16.mxu0 %v974_v9 }
  0x95   :  { %765 = vmatmul.mubr.f32.gmra.mrb[2].mxu1 %v158_v3 }
  0x96   :  { %852 = vmatpush3.bf16.msra.mxu1 %v849_v34  ;;  %818 = vmatmul.mubr.msk.f32.vlgmr.msra.gmra.mrb[0].mxu0 %vm42_vm0, %v35_v51 }
  0x97   :  { %775 = vmatprep.mubr.msk.f32.mxu1 %vm42_vm0, %v34_v43  ;;  %820 = vmatprep.mubr.msk.f32.mxu0 %vm42_vm0, %v36_v42 }
  0x98   :  { %880 = vmatpush3.bf16.msra.mxu0 %v974_v9  ;;  %854 = vmatprep.subr.bf16.mxu1 %v853_v35 }
  0x99   :  { %776 = vmatmul.mubr.msk.f32.vlgmr.msra.gmra.mrb[0].mxu1 %vm42_vm0, %v35_v51  ;;  %882 = vmatprep.subr.bf16.mxu0 %v984_v14 }
  0x9a   :  { %856 = vmatpush3.bf16.msra.mxu1 %v853_v35  ;;  %821 = vmatmul.mubr.msk.f32.gmra.mrb[2].mxu0 %vm42_vm0, %v37_v50 }
  0x9b   :  { %778 = vmatprep.mubr.msk.f32.mxu1 %vm42_vm0, %v36_v42  ;;  %831 = vmatprep.mubr.msk.f32.mxu0 %vm42_vm0, %v34_v43 }
  0x9c   :  { %884 = vmatpush3.bf16.msra.mxu0 %v984_v14  ;;  %858 = vmatprep.subr.bf16.mxu1 %v992_v36 }
  0x9d   :  { %779 = vmatmul.mubr.msk.f32.gmra.mrb[2].mxu1 %vm42_vm0, %v37_v50 }
  0x9e   :  { %860 = vmatpush3.bf16.msra.mxu1 %v992_v36  ;;  %789 = vmatprep.mubr.f32.mxu1 %v125_v47 }
  0x9f   :  { %832 = vmatmul.mubr.msk.f32.vlgmr.msra.gmra.mrb[0].mxu0 %vm42_vm0, %v35_v51 }
  0xa0   :  { %834 = vmatprep.mubr.msk.f32.mxu0 %vm42_vm0, %v36_v42 }
  0xa1   :  { %790 = vmatmul.mubr.f32.vlgmr.msra.gmra.mrb[0].mxu1 %v135_v57 }
  0xa2   :  { %792 = vmatprep.mubr.f32.mxu1 %v145_v46 }
  0xa3   :  { %835 = vmatmul.mubr.msk.f32.gmra.mrb[2].mxu0 %vm42_vm0, %v37_v50 }
  0xa5   :  { %793 = vmatmul.mubr.f32.gmra.mrb[2].mxu1 %v155_v56 }
 0x172   :  { %v833_v4 = vpop.f32.mrb[0].mxu0 }
 0x173   :  { %v647_v5 = vpop.f32.mrb[1].mxu0 }
 0x174   :  { %v791_v6 = vpop.f32.mrb[0].mxu1 }
 0x175   :  { %v885_v7 = vadd.f32 %v833_v4, %v791_v6  ;;  %v349_v8 = vpop.f32.mrb[1].mxu1 }
 0x176   :  { %v836_v9 = vpop.f32.mrb[2].mxu0  ;;  %v886_v10 = vadd.f32 %v647_v5, %v349_v8 }
 0x177   :  { %v670_v11 = vmul.f32 10.0, %v885_v7  ;;  %v659_v12 = vpop.f32.mrb[3].mxu0 }
 0x178   :  { %v669_v13 = vmul.f32 10.0, %v886_v10  ;;  %v794_v14 = vpop.f32.mrb[2].mxu1 }
 0x179   :  { %674 = vst [vmem:[#allocation2 + $0x8] sm:$0xff] %v670_v11  ;;  %v887_v15 = vadd.f32 %v836_v9, %v794_v14  ;;  %v363_v16 = vpop.f32.mrb[3].mxu1 }
 0x17a   :  { %673 = vst [vmem:[#allocation2] sm:$0xff] %v669_v13  ;;  %v888_v17 = vadd.f32 %v659_v12, %v363_v16 }
 0x17b   :  { %v672_v18 = vmul.f32 10.0, %v887_v15 }
 0x17c   :  { %v671_v19 = vmul.f32 10.0, %v888_v17 }
 0x17d   :  { %676 = vst [vmem:[#allocation2 + $0x18] sm:$0xff] %v672_v18 }
 0x17e   :  { %675 = vst [vmem:[#allocation2 + $0x10] sm:$0xff] %v671_v19 }
 0x17f   :  { %923 = shalt.err (!%p920_p4)
}
 0x180   :  { %s924_s28 = scalar_lea.hbm %s1030_s2, 512 }
 0x181   :  { %p925_p5 = scmp.ne.s32.totalorder %s1030_s2, %s924_s28  ;;  %p928_p6 = scmp.lt.u32.totalorder %s924_s28, %s1030_s2 }
 0x183   :  { %p930_p7 = pnand %p928_p6, %p925_p5 }
 0x185   :  { %933 = shalt.err (!%p930_p7)
}
 0x186   :  { %s939_s5 = smov 128   ;;  %s940_s6 = smov 8  }
 0x187   :  { %688 = dma.vmem_to_hbm [thread:$0]  %s683_s1, 512, %s1030_s2, [#allocation3], %s939_s5, %s939_s5, %s940_s6  }
 0x188   :  { %934 = dma.done.wait [#allocation3], 512  }
 0x189   :  { %935 = vsyncadd [#allocation3], 4294966784 }
 0x18a   :  { %692 = vsyncpa [#allocation3], 1 }

</bundles_post_ra>
